<compile_context>
chip_gen: v7x
topology: tpu7x:2x2x1
jax: 0.10.0
libtpu: 0.0.40
codegen_flags: <defaults>
</compile_context>

<pallas_src>
import functools
import math

import jax
import jax.numpy as jnp
from jax.experimental import pallas as pl
from jax.experimental.pallas import tpu as pltpu


def _round_up(x, m):
    return (x + m - 1) // m * m


def _vmem_capacity_bytes():
    try:
        info = pltpu.get_tpu_info()
        cap = getattr(info, "vmem_capacity_bytes", None)
        if cap:
            return int(cap)
    except Exception:
        pass
    return 64 * 1024 * 1024          # conservative default (v7x per-core VMEM)


def _dwconv1d_kernel(x_ref, w_ref, b_ref, o_ref, *, ksz, stride, has_bias):
    """One (row-tile, multiplier) step of a depthwise 1-D convolution.

    x_ref : (stride, RT, T_PH)  phase-deinterleaved, zero-padded input rows
    w_ref : (1, RT, ksz)        f32 taps for this multiplier slice
    b_ref : (1, RT, 1)          f32 bias (ignored when has_bias=False)
    o_ref : (RT, T_OUT)         lane-dense output slab (multiple of 128)
    """
    t_out = o_ref.shape[-1]
    # Hoisted f32 cast: one load+cast per used phase instead of one per tap.
    n_phase = min(stride, ksz)
    xf = [x_ref[p].astype(jnp.float32) for p in range(n_phase)]
    w = w_ref[0]                                    # (RT, ksz), already f32
    acc = b_ref[0] if has_bias else None            # (RT, 1): broadcasts in 1st add
    # kernel_size is small and static -> fully unrolled tap loop; each tap is
    # one broadcasted VPU multiply-add over a contiguous lane-dense window.
    for k in range(ksz):
        off = k // stride
        win = xf[k % stride][:, off:off + t_out]    # contiguous lane slice
        term = w[:, k:k + 1] * win
        acc = term if acc is None else acc + term
    o_ref[...] = acc.astype(o_ref.dtype)


def depthwise_conv1d(x, weight, bias=None, *, stride=1, padding=0):
    """Depthwise 1-D convolution.

    x:      (B, C_in, T)
    weight: (C_out, 1, ksz)   -- nn.Conv1d(groups=C_in) layout, C_out = K*C_in
    bias:   (C_out,) or None
    returns (B, C_out, T_out),  T_out = (T + 2*padding - ksz)//stride + 1
    """
    B, C_in, T = x.shape
    C_out, w_groups, ksz = weight.shape
    assert w_groups == 1, "depthwise weight must have shape (C_out, 1, ksz)"
    assert C_out % C_in == 0, "out_channels must be a multiple of in_channels"
    K = C_out // C_in
    T_out = (T + 2 * padding - ksz) // stride + 1
    assert T_out > 0

    dtype = x.dtype
    isz = jnp.dtype(dtype).itemsize

    # --- lane-dense time layout; per-phase length for the deinterleave ---
    t_out_blk = _round_up(T_out, 128)
    t_ph_blk = _round_up(t_out_blk + (ksz - 1) // stride, 128)
    L = stride * t_ph_blk

    # --- fold batch into the sublane (row) axis ---
    rows = B * C_in
    rows8 = _round_up(rows, 8)

    # Per-row VMEM cost: double-buffered in/out blocks + in-kernel f32 temps.
    n_phase = min(stride, ksz)
    per_row = (2 * (stride * t_ph_blk * isz + t_out_blk * isz + (ksz + 1) * 4)
               + (n_phase * t_ph_blk + 3 * t_out_blk) * 4)

    # --- generation-aware tile budget / scoped-VMEM limit ---
    vmem_cap = _vmem_capacity_bytes()
    if vmem_cap >= 96 * 1024 * 1024:          # v5e / v6e: 128 MiB VMEM
        tile_budget, limit_cap = 56 * 1024 * 1024, 100 * 1024 * 1024
    else:                                     # v7x: 64 MiB VMEM per TensorCore
        tile_budget, limit_cap = 26 * 1024 * 1024, 48 * 1024 * 1024

    row_tile = max(8, (tile_budget // per_row) // 8 * 8)
    row_tile = min(row_tile, rows8)
    if rows8 >= 16:
        # keep >=2 grid steps on the "parallel" axis so v7x's 2 TCs both work
        row_tile = min(row_tile, _round_up(rows8 // 2, 8))
    rows_pad = _round_up(rows, row_tile)
    n_row_tiles = rows_pad // row_tile

    # --- wrapper-side layout prep (one pass over the input) ---
    # TODO(synk): fuse this pad/transpose into the pallas_call operands
    # (allow_input_fusion) or DMA into a zero-initialized VMEM scratch to save
    # the extra HBM pass; also halo-tile the time axis for very long sequences.
    xp = jnp.pad(x, ((0, 0), (0, 0), (padding, 0)))            # left conv pad
    tail = L - xp.shape[-1]
    if tail >= 0:
        xp = jnp.pad(xp, ((0, 0), (0, 0), (0, tail)))          # right zeros
    else:
        xp = xp[:, :, :L]                                      # never-read tail
    # phase de-interleave: x_ph[r, row, q] = x_pad[row, stride*q + r]
    xp = xp.reshape(B, C_in, t_ph_blk, stride)
    xp = jnp.transpose(xp, (3, 0, 1, 2)).reshape(stride, rows, t_ph_blk)
    xp = jnp.pad(xp, ((0, 0), (0, rows_pad - rows), (0, 0)))

    # Weights / bias kept in f32 (parameter precision), laid out per-row so the
    # (tiny) tile for each grid step is contiguous.  Row r = b*C_in + c.
    w_r = weight.reshape(C_in, K, ksz).astype(jnp.float32)      # [c, kk, tap]
    w_r = jnp.transpose(w_r, (1, 0, 2))                         # (K, C_in, ksz)
    w_r = jnp.tile(w_r, (1, B, 1))                              # (K, rows, ksz)
    w_r = jnp.pad(w_r, ((0, 0), (0, rows_pad - rows), (0, 0)))

    if bias is None:
        b_r = jnp.zeros((K, rows_pad, 1), jnp.float32)
    else:
        b_r = jnp.transpose(bias.reshape(C_in, K).astype(jnp.float32), (1, 0))
        b_r = jnp.tile(b_r, (1, B))
        b_r = jnp.pad(b_r, ((0, 0), (0, rows_pad - rows)))[..., None]

    grid = (n_row_tiles, K)
    kernel = functools.partial(_dwconv1d_kernel, ksz=ksz, stride=stride,
                               has_bias=bias is not None)

    flops = 2 * B * C_out * T_out * ksz
    bytes_accessed = int(xp.size * isz + w_r.size * 4 + b_r.size * 4
                         + rows_pad * K * t_out_blk * isz)

    blocks_bytes = 2 * row_tile * (stride * t_ph_blk * isz + t_out_blk * isz
                                   + (ksz + 1) * 4)
    temps_bytes = row_tile * (n_phase * t_ph_blk + 3 * t_out_blk) * 4
    vmem_need = blocks_bytes + temps_bytes
    vmem_limit = int(min(max(int(vmem_need * 1.25) + (2 << 20), 32 << 20),
                         limit_cap))
    if vmem_need + (2 << 20) > vmem_limit:        # very long T: degrade, don't fail
        vmem_limit = int(min(int(vmem_need * 1.1) + (2 << 20), vmem_cap))

    out = pl.pallas_call(
        kernel,
        out_shape=jax.ShapeDtypeStruct((rows_pad, K * t_out_blk), dtype),
        grid_spec=pltpu.PrefetchScalarGridSpec(
            num_scalar_prefetch=0,
            grid=grid,
            in_specs=[
                # x block index is independent of kk -> fetched once, reused K x
                pl.BlockSpec((stride, row_tile, t_ph_blk), lambda i, kk: (0, i, 0)),
                pl.BlockSpec((1, row_tile, ksz), lambda i, kk: (kk, i, 0)),
                pl.BlockSpec((1, row_tile, 1), lambda i, kk: (kk, i, 0)),
            ],
            out_specs=pl.BlockSpec((row_tile, t_out_blk), lambda i, kk: (i, kk)),
        ),
        compiler_params=pltpu.CompilerParams(
            dimension_semantics=("parallel", "arbitrary"),
            vmem_limit_bytes=vmem_limit,
        ),
        cost_estimate=pl.CostEstimate(flops=flops, transcendentals=0,
                                      bytes_accessed=bytes_accessed),
    )(xp, w_r, b_r)

    # out[row, kk*t_out_blk + t]  ->  y[b, c*K + kk, t]   (row = b*C_in + c)
    out = out[:rows].reshape(B, C_in, K, t_out_blk)[..., :T_out]
    return out.reshape(B, C_out, T_out)


def reference_dwconv1d(x, weight, bias=None, *, stride=1, padding=0):
    out = jax.lax.conv_general_dilated(
        x.astype(jnp.float32), weight.astype(jnp.float32),
        window_strides=(stride,),
        padding=[(padding, padding)],
        dimension_numbers=("NCH", "OIH", "NCH"),
        feature_group_count=x.shape[1],
    )
    if bias is not None:
        out = out + bias.astype(jnp.float32)[None, :, None]
    return out.astype(x.dtype)


if __name__ == "__main__":
    key = jax.random.PRNGKey(0)
    k1, k2, k3, k4 = jax.random.split(key, 4)

    B, C_in, T = 2, 16, 48
    x = jax.random.normal(k1, (B, C_in, T), jnp.float32)

    # Case 1: channel multiplier K=2, module defaults (bias=False).
    K, ksz, stride, padding = 2, 3, 1, 1
    C_out = C_in * K
    w = jax.random.normal(k2, (C_out, 1, ksz), jnp.float32) / math.sqrt(ksz)
    y = jax.block_until_ready(
        depthwise_conv1d(x, w, None, stride=stride, padding=padding))
    y_ref = reference_dwconv1d(x, w, None, stride=stride, padding=padding)
    assert y.shape == (B, C_out, (T + 2 * padding - ksz) // stride + 1)
    assert jnp.allclose(y, y_ref, atol=1e-4, rtol=1e-4), "case 1 mismatch"

    # Case 2: K=1 (Conformer-style), kernel_size=5, 'same' padding, bias=True.
    ksz2, pad2 = 5, 2
    w_2 = jax.random.normal(k3, (C_in, 1, ksz2), jnp.float32) / math.sqrt(ksz2)
    b_2 = jax.random.normal(jax.random.PRNGKey(1), (C_in,), jnp.float32)
    y2 = jax.block_until_ready(
        depthwise_conv1d(x, w_2, b_2, stride=1, padding=pad2))
    y2_ref = reference_dwconv1d(x, w_2, b_2, stride=1, padding=pad2)
    assert y2.shape == (B, C_in, T)
    assert jnp.allclose(y2, y2_ref, atol=1e-4, rtol=1e-4), "case 2 mismatch"

    # Case 3: stride=2 exercises the phase-deinterleaved input layout.
    ksz3, stride3, pad3 = 3, 2, 1
    w_3 = jax.random.normal(k4, (C_in, 1, ksz3), jnp.float32) / math.sqrt(ksz3)
    y3 = jax.block_until_ready(
        depthwise_conv1d(x, w_3, None, stride=stride3, padding=pad3))
    y3_ref = reference_dwconv1d(x, w_3, None, stride=stride3, padding=pad3)
    assert y3.shape == (B, C_in, (T + 2 * pad3 - ksz3) // stride3 + 1)
    assert jnp.allclose(y3, y3_ref, atol=1e-4, rtol=1e-4), "case 3 mismatch"

    print("KERNEL_OK")
</pallas_src>

<mosaic_0001>
module attributes {stable_mosaic.version = 11 : i64} {
  func.func @_dwconv1d_kernel(%arg0: i32, %arg1: i32, %arg2: memref<1x16x256xf32, #tpu.memory_space<vmem>>, %arg3: memref<1x16x3xf32, #tpu.memory_space<vmem>>, %arg4: memref<1x16x1xf32, #tpu.memory_space<vmem>>, %arg5: memref<16x128xf32, #tpu.memory_space<vmem>>) attributes {dimension_semantics = [#tpu.dimension_semantics<parallel>, #tpu.dimension_semantics<arbitrary>], iteration_bounds = array<i64: 2, 2>, scalar_prefetch = 0 : i64, scratch_operands = 0 : i64, tpu.core_type = #tpu.core_type<tc>, window_params = [{transform_indices = @transform_0, window_bounds = array<i64: 1, 16, 256>}, {transform_indices = @transform_1, window_bounds = array<i64: 1, 16, 3>}, {transform_indices = @transform_2, window_bounds = array<i64: 1, 16, 1>}, {transform_indices = @transform_3, window_bounds = array<i64: 16, 128>}]} {
    %c0 = arith.constant 0 : index
    %c0_0 = arith.constant 0 : index
    %c0_1 = arith.constant 0 : index
    %0 = vector.load %arg2[%c0, %c0_0, %c0_1] : memref<1x16x256xf32, #tpu.memory_space<vmem>>, vector<1x16x256xf32>
    %1 = vector.shape_cast %0 : vector<1x16x256xf32> to vector<16x256xf32>
    %c0_2 = arith.constant 0 : index
    %c0_3 = arith.constant 0 : index
    %c0_4 = arith.constant 0 : index
    %2 = vector.load %arg3[%c0_2, %c0_3, %c0_4] : memref<1x16x3xf32, #tpu.memory_space<vmem>>, vector<1x16x3xf32>
    %3 = vector.shape_cast %2 : vector<1x16x3xf32> to vector<16x3xf32>
    %4 = vector.extract_strided_slice %1 {offsets = [0, 0], sizes = [16, 128], strides = [1, 1]} : vector<16x256xf32> to vector<16x128xf32>
    %5 = vector.extract_strided_slice %3 {offsets = [0, 0], sizes = [16, 1], strides = [1, 1]} : vector<16x3xf32> to vector<16x1xf32>
    %6 = vector.broadcast %5 : vector<16x1xf32> to vector<16x128xf32>
    %7 = arith.mulf %6, %4 : vector<16x128xf32>
    %8 = vector.extract_strided_slice %1 {offsets = [0, 1], sizes = [16, 128], strides = [1, 1]} : vector<16x256xf32> to vector<16x128xf32>
    %9 = vector.extract_strided_slice %3 {offsets = [0, 1], sizes = [16, 1], strides = [1, 1]} : vector<16x3xf32> to vector<16x1xf32>
    %10 = vector.broadcast %9 : vector<16x1xf32> to vector<16x128xf32>
    %11 = arith.mulf %10, %8 : vector<16x128xf32>
    %12 = arith.addf %7, %11 : vector<16x128xf32>
    %13 = vector.extract_strided_slice %1 {offsets = [0, 2], sizes = [16, 128], strides = [1, 1]} : vector<16x256xf32> to vector<16x128xf32>
    %14 = vector.extract_strided_slice %3 {offsets = [0, 2], sizes = [16, 1], strides = [1, 1]} : vector<16x3xf32> to vector<16x1xf32>
    %15 = vector.broadcast %14 : vector<16x1xf32> to vector<16x128xf32>
    %16 = arith.mulf %15, %13 : vector<16x128xf32>
    %17 = arith.addf %12, %16 : vector<16x128xf32>
    %c0_5 = arith.constant 0 : index
    %c0_6 = arith.constant 0 : index
    %18 = vector.load %arg5[%c0_5, %c0_6] : memref<16x128xf32, #tpu.memory_space<vmem>>, vector<16x128xf32>
    tpu.vector_store %arg5[%c0_5, %c0_6], %17 {strides = array<i32>} : memref<16x128xf32, #tpu.memory_space<vmem>>, vector<16x128xf32>,
    return
  }
  func.func @transform_0(%arg0: i32, %arg1: i32) -> (i32, i32, i32) {
    %c0_i32 = arith.constant 0 : i32
    %c0_i32_0 = arith.constant 0 : i32
    %c0_i32_1 = arith.constant 0 : i32
    return %c0_i32, %arg0, %c0_i32_0 : i32, i32, i32
  }
  func.func @transform_1(%arg0: i32, %arg1: i32) -> (i32, i32, i32) {
    %c0_i32 = arith.constant 0 : i32
    %c0_i32_0 = arith.constant 0 : i32
    return %arg1, %arg0, %c0_i32 : i32, i32, i32
  }
  func.func @transform_2(%arg0: i32, %arg1: i32) -> (i32, i32, i32) {
    %c0_i32 = arith.constant 0 : i32
    %c0_i32_0 = arith.constant 0 : i32
    return %arg1, %arg0, %c0_i32 : i32, i32, i32
  }
  func.func @transform_3(%arg0: i32, %arg1: i32) -> (i32, i32) {
    %c0_i32 = arith.constant 0 : i32
    return %arg0, %arg1 : i32, i32
  }
}

</mosaic_0001>

<bundles_post_ra>
// kernel: tpu_custom_call.1
= control target key start
LH: loop header
LB: loop body
LE: loop exit
PB: predicated region body
PF: predicated region fallthrough
CT: control target
= control target key end

     0   :  { %8 = vsyncpa [#allocation3], 0  ;;  %s843_s0 = inlined_call_operand.vmem [shape: f32[1,32,256], index: 0, kind: input, shape index: {}]   ;;  %s844_s1 = inlined_call_operand.vmem [shape: f32[2,32,3], index: 1, kind: input, shape index: {}]   ;;  %s845_s2 = inlined_call_operand.vmem [shape: f32[2,32,1], index: 2, kind: input, shape index: {}]   ;;  %s846_s3 = inlined_call_operand.hbm [shape: f32[32,256], index: 3, kind: output, shape index: {}]  }
   0x1   :  { %10 = vsyncpa [#allocation3 + $0x1], 0  ;;  %s699_s12 = smov 0   ;;  %s701_s13 = smov 0  }
   0x2   :  { %s703_s14 = smov 0   ;;  %s705_s15 = smov 0  }
   0x3   :  { %s707_s16 = smov 0   ;;  %s709_s17 = smov 0  }
   0x4   :  { %s711_s18 = smov 0   ;;  %s713_s2 = smov 0  }
   0x5 LB: > { %s470_s19 = sadd.s32 4294967295, %s668_s2   ;;  %s471_s20 = sadd.s32 4294967294, %s668_s2   ;;  %s668_s2 = sphi %s713_s2, %s16_s2   ;;  %s664_s18 = sphi %s711_s18, %s855_s18   ;;  %s660_s17 = sphi %s709_s17, %s854_s17   ;;  %s656_s16 = sphi %s707_s16, %s853_s16   ;;  %s652_s15 = sphi %s705_s15, %s852_s15   ;;  %s648_s14 = sphi %s703_s14, %s851_s14   ;;  %s644_s13 = sphi %s701_s13, %s850_s13   ;;  %s640_s12 = sphi %s699_s12, %s849_s12  }
   0x6   : > { %s25_s21 = sadd.s32 1, %s660_s17  ;;  %s28_s22 = sadd.s32 1, %s664_s18 }
   0x7   : > { %p26_p0 = scmp.ge.s32.totalorder %s25_s21, 2  ;;  %p129_p1 = scmp.ne.s32.totalorder %s648_s14, %s644_s13 }
   0x8   : > { %p130_p2 = scmp.eq.s32.totalorder %s470_s19, 3  ;;  %p135_p5 = scmp.ne.s32.totalorder %s644_s13, %s640_s12 }
   0x9   : > { %s857_s21 = smov (%p26_p0, %s25_s21), 0  ;;  %s859_s22 = smov (!%p26_p0, %s28_s22), %s664_s18 }
   0xa   : > { %s115_s23 = ssub.s32 %s660_s17, %s857_s21  ;;  %p750_p3 = por %p130_p2, %p129_p1 }
   0xb   : > { %p30_p4 = scmp.ge.s32.totalorder %s859_s22, 2  ;;  %p136_p6 = scmp.eq.s32.totalorder %s471_s20, 3 }
   0xc   : > { %p474_p7 = scmp.ge.s32.totalorder %s668_s2, 1  ;;  %p190_p9 = scmp.lt.s32.totalorder %s668_s2, 5 }
   0xd   : > { %s861_s22 = smov (%p30_p4, %s859_s22), 0  ;;  %p759_p8 = por %p136_p6, %p135_p5 }
   0xe   : > { %s114_s26 = ssub.s32 %s664_s18, %s861_s22  ;;  %s119_s27 = sadd.s32 1, %s648_s14 }
   0xf   : > { %s116_s28 = sor.u32 %s115_s23, %s114_s26  ;;  %p191_p10 = pnand %p474_p7, %p190_p9 }
  0x10   : > { %p117_p11 = scmp.eq.s32.totalorder %s116_s28, 0  ;;  %s476_s30 = sshll.u32 (!%p191_p10), %s656_s16, 1  ;;  %v670_v0 = vmov (!%p191_p10), 1   ;;  %v671_v1 = vmov (!%p191_p10), 2   ;;  %v672_v4 = vmov (!%p191_p10), 0   ;;  %vm303_vm0 = vcmask (!%p191_p10), 1039360  }
  0x11   : > { %194 = sbr.rel (%p191_p10) target bundleno = 307 (0x133), region = 32  ;;  %p241_p12 = scmp.lt.s32.totalorder (!%p191_p10), %s652_s15, 1  ;;  %569 = vset.pattern.permute.xlu0 (!%p191_p10), %v670_v0  ;;  %570 = vset.pattern.permute.xlu1 (!%p191_p10), %v671_v1  ;;  %vm334_vm1 = vcmask (!%p191_p10), 1031168  }
  0x12   : > { %s768_s29 = scalar_select %p117_p11, %s648_s14, %s119_s27  }
  0x13   : > { %p234_p13 = scmp.lt.s32.totalorder (!%p191_p10), %s476_s30, 3  ;;  %s673_s26 = smov (!%p191_p10), 127  }
  0x14   : > { %s674_s27 = smov (!%p191_p10), 126   ;;  %s230_s28 = sand.u32 (!%p191_p10), 1, %s644_s13  }
  0x15   : > { %s675_s19 = smov (!%p191_p10), [#allocation2]  }
  0x16   : > { %s578_s20 = sshll.u32 (!%p191_p10), %s675_s19, 4  ;;  %s579_s20 = int_to_ptr.vmem [resolvable:$false] %s578_s20 }
  0x18   : > { %s242_s4 = scalar_select %p241_p12, %s652_s15, 1 }
  0x19   : > { %s863_s30 = smov (!%p234_p13, %s476_s30), 3 }
  0x1a   : > { %s480_s5 = sshll.u32 %s242_s4, 2  ;;  %s488_s11 = sshll.u32 %s863_s30, 4 }
  0x1b   : > { %s246_s6 = sadd.s32 %s480_s5, %s863_s30  ;;  %s238_s23 = scalar_lea.vmem %s843_s0, %s488_s11 }
  0x1c   : > { %s481_s7 = sshll.u32 %s246_s6, 3  ;;  %v261_v5 = vld [vmem:[%s238_s23] sm:$0xff]  ;;  %v262_v6 = vld [vmem:[%s238_s23 + $0x8] sm:$0xff]  ;;  %v263_v10 = vld [vmem:[%s238_s23 + $0x10] sm:$0xff]  ;;  %s489_s30 = sshll.u32 %s656_s16, 2 }
  0x1d   : > { %s248_s10 = scalar_lea.vmem %s844_s1, %s481_s7  ;;  %v264_v11 = vld [vmem:[%s238_s23 + $0x18] sm:$0xff]  ;;  %s475_s4 = sshll.u32 %s230_s28, 4 }
  0x1e   : > { %v265_v2 = vld [vmem:[%s248_s10] sm:$0xff]  ;;  %v266_v3 = vld [vmem:[%s248_s10 + $0x8] sm:$0xff]  ;;  %s356_s5 = sadd.s32 %s652_s15, %s489_s30  ;;  %s232_s6 = scalar_lea.vmem [#allocation2], %s475_s4 }
  0x1f   : > { %280 = vperm.xlu0 %569, %v265_v2   ;;  %311 = vperm.xlu1 %570, %v265_v2   ;;  %s359_s7 = sshll.u32 %s232_s6, 4  ;;  %s485_s8 = sshll.u32 %s356_s5, 7  ;;  %s783_s7 = int_to_ptr.vmem [resolvable:$true] %s359_s7 }
  0x20   : > { %s789_s9 = scalar_lea.hbm %s846_s3, %s485_s8  ;;  %s791_s10 = scalar_lea.sflag [#allocation3], %s230_s28 }
  0x21   : > { %s574_s11 = scalar_lea.vmem %s783_s7, 256  ;;  %s580_s23 = scalar_lea.vmem %s579_s20, 512 }
  0x22   : > { %p575_p0 = scmp.ne.s32.totalorder %s783_s7, %s574_s11  ;;  %p581_p4 = scmp.lt.s32.totalorder %s783_s7, %s579_s20 }
  0x23   : > { %284 = vperm.xlu0 %569, %v266_v3   ;;  %315 = vperm.xlu1 %570, %v266_v3   ;;  %p582_p5 = scmp.lt.s32.totalorder %s580_s23, %s574_s11 }
  0x24   : > { %p576_p1 = pnand %p575_p0, %p750_p3 }
  0x25   : > { %p583_p6 = por %p582_p5, %p581_p4 }
  0x26   : > { %p577_p2 = pneg %p576_p1 }
  0x27   : > { %572 = vset.pattern.permute.xlu1 %v672_v4  ;;  %571 = vset.pattern.permute.xlu0 %v672_v4 }
  0x28   : > { %274 = vperm.xlu1 %572, %v266_v3   ;;  %269 = vperm.xlu0 %571, %v265_v2   ;;  %p584_p7 = pnand %p583_p6, %p577_p2 }
  0x2c   : > { %573 = vset.pattern.permute.xlu0 %v671_v1 }
  0x9e   : > { %v281_v7 = vpop.permute.xlu0 %280  ;;  %v312_v12 = vpop.permute.xlu1 %311 }
  0x9f   : > { %v287_v8 = vmul.f32 %v281_v7, %v261_v5  ;;  %v288_v9 = vmul.f32 %v281_v7, %v262_v6  ;;  %v318_v16 = vmul.f32 %v312_v12, %v261_v5  ;;  %v319_v17 = vmul.f32 %v312_v12, %v262_v6 }
  0xa1   : > { %297 = vrot.lane.b32.xlu0 %v288_v9, %s673_s26  ;;  %295 = vrot.lane.b32.xlu1 %v287_v8, %s673_s26 }
  0xa2   : > { %v285_v13 = vpop.permute.xlu0 %284  ;;  %v316_v18 = vpop.permute.xlu1 %315 }
  0xa3   : > { %v289_v14 = vmul.f32 %v285_v13, %v263_v10  ;;  %v290_v15 = vmul.f32 %v285_v13, %v264_v11  ;;  %v320_v19 = vmul.f32 %v316_v18, %v263_v10  ;;  %v321_v20 = vmul.f32 %v316_v18, %v264_v11 }
  0xa5   : > { %301 = vrot.lane.b32.xlu0 %v290_v15, %s673_s26  ;;  %299 = vrot.lane.b32.xlu1 %v289_v14, %s673_s26 }
  0xa7   : > { %v275_v21 = vpop.permute.xlu1 %274  ;;  %v270_v22 = vpop.permute.xlu0 %269 }
  0xa8   : > { %v277_v28 = vmul.f32 %v270_v22, %v261_v5  ;;  %v278_v34 = vmul.f32 %v275_v21, %v263_v10 }
  0xa9   : > { %328 = vrot.lane.b32.xlu0 %v319_v17, %s674_s27  ;;  %326 = vrot.lane.b32.xlu1 %v318_v16, %s674_s27 }
  0xad   : > { %332 = vrot.lane.b32.xlu0 %v321_v20, %s674_s27  ;;  %330 = vrot.lane.b32.xlu1 %v320_v19, %s674_s27 }
 0x113   : > { %v298_v23 = vpop.permute.xlu0 %297  ;;  %v296_v24 = vpop.permute.xlu1 %295 }
 0x114   : > { %v304_v27 = vsel %vm303_vm0, %v296_v24, %v298_v23 }
 0x115   : > { %v308_v29 = vadd.f32 %v304_v27, %v277_v28 }
 0x117   : > { %v302_v25 = vpop.permute.xlu0 %301  ;;  %v300_v26 = vpop.permute.xlu1 %299 }
 0x118   : > { %v305_v32 = vsel %vm303_vm0, %v300_v26, %v302_v25 }
 0x119   : > { %v309_v36 = vadd.f32 %v305_v32, %v278_v34 }
 0x11b   : > { %v329_v30 = vpop.permute.xlu0 %328  ;;  %v327_v31 = vpop.permute.xlu1 %326 }
 0x11c   : > { %v335_v33 = vsel %vm334_vm1, %v327_v31, %v329_v30 }
 0x11d   : > { %v339_v35 = vadd.f32 %v335_v33, %v308_v29 }
 0x11f   : > { %341 = vst [vmem:[%s232_s6] sm:$0xff] %v339_v35  ;;  %v333_v37 = vpop.permute.xlu0 %332  ;;  %v331_v38 = vpop.permute.xlu1 %330 }
 0x120   : > { %v336_v39 = vsel %vm334_vm1, %v331_v38, %v333_v37 }
 0x121   : > { %v340_v40 = vadd.f32 %v336_v39, %v309_v36 }
 0x123   : > { %342 = vst [vmem:[%s232_s6 + $0x8] sm:$0xff] %v340_v40 }
 0x124   : > { %587 = shalt.err (!%p584_p7)
}
 0x125   : > { %s588_s26 = scalar_lea.hbm %s789_s9, 256  ;;  %s592_s30 = scalar_lea.hbm %s846_s3, 1024 }
 0x126   : > { %p589_p9 = scmp.ne.s32.totalorder %s789_s9, %s588_s26  ;;  %p593_p12 = scmp.lt.u32.totalorder %s789_s9, %s846_s3 }
 0x127   : > { %p594_p13 = scmp.lt.u32.totalorder %s592_s30, %s588_s26  ;;  %p596_p1 = scmp.lt.u32.totalorder %s588_s26, %s789_s9 }
 0x128   : > { %p590_p10 = pnand %p589_p9, %p750_p3 }
 0x129   : > { %p595_p0 = por %p594_p13, %p593_p12 }
 0x12a   : > { %p591_p11 = pneg %p590_p10 }
 0x12b   : > { %p597_p2 = por %p596_p1, %p595_p0 }
 0x12d   : > { %p598_p4 = pnand %p597_p2, %p591_p11 }
 0x12f   : > { %601 = shalt.err (!%p598_p4)
}
 0x130   : > { %s676_s6 = smov 128   ;;  %s677_s8 = smov 256  }
 0x131   : > { %s678_s15 = smov 8  }
 0x132   : > { %490 = dma.vmem_to_hbm [thread:$0]  (%p750_p3), %s783_s7, 256, %s789_s9, %s791_s10, %s676_s6, %s677_s8, %s678_s15  }
 0x133 PF: > { %p496_p5 = scmp.ge.s32.totalorder %s668_s2, 2  ;;  %s374_s16 = sand.u32 1, %s640_s12  }
 0x134   : > { %s375_s11 = scalar_lea.sflag [#allocation3], %s374_s16 }
 0x135   : > { %p493_p6 = pnand %p496_p5, %p759_p8 }
 0x137   : > { %635 = dma.done.wait (!%p493_p6), %s375_s11, 256  }
 0x138   : > { %637 = vsyncadd (!%p493_p6), %s375_s11, 4294967040  ;;  %s16_s2 = sadd.s32 1, %s668_s2   ;;  %s849_s12 = smov %s644_s13 }
 0x139   : > { %p13_p7 = scmp.ge.s32.totalorder %s16_s2, 6   ;;  %s850_s13 = smov %s648_s14 }
 0x13a   : > { %s851_s14 = smov %s768_s29  ;;  %s852_s15 = smov %s660_s17 }
 0x13b   : > { %s853_s16 = smov %s664_s18  ;;  %s854_s17 = smov %s857_s21 }
 0x13c   : > { %s855_s18 = smov %s861_s22  ;;  %15 = sbr.rel (!%p13_p7) target bundleno = 5 (0x5), region = 73 }
 0x143   :  { %380 = vsyncpa [#allocation3], 1 }
 0x144   :  { %382 = vsyncpa [#allocation3 + $0x1], 1 }

</bundles_post_ra>
